<compile_context>
chip_gen: v5e
topology: v5e:2x2
jax: 0.10.0
libtpu: 0.0.40
codegen_flags: <defaults>
</compile_context>

<pallas_src>
import functools

import jax
import jax.numpy as jnp
from jax import lax
from jax.experimental import pallas as pl
from jax.experimental.pallas import tpu as pltpu


def _round_up(a, b):
    return ((a + b - 1) // b) * b


def _estimate_means_kernel(y_ref, x_ref, means_ref, sums_acc, counts_acc, *, K_pad):
    """Accumulate per-class sums/counts over sample tiles; normalize at the end.

    y_ref:      (1, TILE_N) int32 labels (padded rows carry -1)
    x_ref:      (TILE_N, d) f32 features (padded rows are zero)
    means_ref:  (K_pad, d)  f32 output
    sums_acc:   (K_pad, d)  f32 VMEM scratch
    counts_acc: (K_pad, 1)  f32 VMEM scratch
    """
    i = pl.program_id(0)

    @pl.when(i == 0)
    def _init():
        sums_acc[...] = jnp.zeros_like(sums_acc)
        counts_acc[...] = jnp.zeros_like(counts_acc)

    labels = y_ref[...]                                        # (1, TILE_N) int32
    x = x_ref[...]                                             # (TILE_N, d) f32
    tile_n = x.shape[0]

    # One-hot mask built in MXU-native (K_pad, TILE_N) orientation; labels sit
    # along lanes, so the compare is a cheap sublane broadcast.  Padded rows
    # (label == -1) never match any class id -> zero contribution.
    class_ids = lax.broadcasted_iota(jnp.int32, (K_pad, tile_n), 0)
    onehot_kt = (class_ids == labels).astype(jnp.float32)      # (K_pad, TILE_N)

    sums_acc[...] += jnp.dot(onehot_kt, x, preferred_element_type=jnp.float32)
    counts_acc[...] += jnp.sum(onehot_kt, axis=1, keepdims=True)

    @pl.when(i == pl.num_programs(0) - 1)
    def _finalize():
        # Single divide at the end (global counts).  0/0 -> NaN for empty
        # classes, matching the PyTorch reference (mean of an empty tensor).
        means_ref[...] = sums_acc[...] / counts_acc[...]


def estimate_means_pallas(x_train, y_train, K):
    """Per-class means of x_train grouped by y_train, via a tiled Pallas kernel."""
    n, d = x_train.shape
    K_pad = max(_round_up(K, 8), 8)

    # Tile the sample axis.  Budget ~8 MiB for the double-buffered inputs so
    # the kernel stays comfortably inside v7x's 64 MiB (32 MiB scoped) VMEM.
    bytes_per_row = (d + 1) * 4
    tile_n = (8 * 1024 * 1024) // (2 * 2 * bytes_per_row)
    tile_n = max(128, min(2048, (tile_n // 128) * 128))
    tile_n = min(tile_n, _round_up(n, 128))
    n_pad = _round_up(n, tile_n)
    num_tiles = n_pad // tile_n

    # Pad samples: features -> 0, labels -> -1 (never matches a class id).
    x_p = jnp.zeros((n_pad, d), jnp.float32).at[:n].set(x_train.astype(jnp.float32))
    y_p = jnp.full((1, n_pad), -1, jnp.int32).at[0, :n].set(y_train.astype(jnp.int32))

    kernel = functools.partial(_estimate_means_kernel, K_pad=K_pad)

    means_pad = pl.pallas_call(
        kernel,
        out_shape=jax.ShapeDtypeStruct((K_pad, d), jnp.float32),
        grid_spec=pltpu.PrefetchScalarGridSpec(
            num_scalar_prefetch=0,
            grid=(num_tiles,),
            in_specs=[
                pl.BlockSpec((1, tile_n), lambda i: (0, i)),   # labels, lanes = samples
                pl.BlockSpec((tile_n, d), lambda i: (i, 0)),   # features
            ],
            out_specs=pl.BlockSpec((K_pad, d), lambda i: (0, 0)),
            scratch_shapes=[
                pltpu.VMEM((K_pad, d), jnp.float32),           # per-class sums
                pltpu.VMEM((K_pad, 1), jnp.float32),           # per-class counts
            ],
        ),
        compiler_params=pltpu.CompilerParams(
            dimension_semantics=("arbitrary",),                # n is a reduction axis
            vmem_limit_bytes=32 * 1024 * 1024,
        ),
    )(y_p, x_p)

    return means_pad[:K]


class GaussianMixtureModel:
    def __init__(self, K, d_dif, d_sim, p_y):
        self.K = K
        self.d_dif = d_dif
        self.d_sim = d_sim
        self.p_y = p_y
        # Matches nn.Parameter(torch.zeros(K, d_dif + d_sim)) — deterministic init.
        self.means = jnp.zeros((K, d_dif + d_sim), dtype=jnp.float32)

    def estimate_means(self, x_train, y_train, method="single"):
        means = estimate_means_pallas(x_train, y_train, self.K)
        if method == "multi" and self.d_sim > 0:
            global_mean = jnp.mean(x_train, axis=0)
            means = means.at[:, -self.d_sim:].set(global_mean[-self.d_sim:])
        self.means = means

    def forward(self):
        # forward() is a pure parameter read-out; no kernel needed (perf review:
        # an identity pallas_call costs an HBM round trip for zero work).
        return self.means

    __call__ = forward


if __name__ == "__main__":
    # Small deterministic example: K=4 components, d_dif=16, d_sim=16, n=64 samples.
    key = jax.random.PRNGKey(0)
    k_x, k_y = jax.random.split(key)
    K, d_dif, d_sim, n = 4, 16, 16, 64
    d = d_dif + d_sim

    p_y = jnp.full((K,), 1.0 / K, dtype=jnp.float32)
    x_train = jax.random.normal(k_x, (n, d), dtype=jnp.float32)
    y_train = jax.random.randint(k_y, (n,), 0, K, dtype=jnp.int32)

    model = GaussianMixtureModel(K, d_dif, d_sim, p_y)
    model.estimate_means(x_train, y_train, method="single")

    out = model.forward()
    out = jax.block_until_ready(out)

    # Reference check against plain-JAX per-class means.
    onehot = jax.nn.one_hot(y_train, K, dtype=jnp.float32)
    ref = (onehot.T @ x_train) / jnp.sum(onehot, axis=0, keepdims=True).T
    assert out.shape == (K, d)
    assert jnp.allclose(out, ref, atol=1e-5, rtol=1e-5)

    print("KERNEL_OK")
</pallas_src>

<mosaic_0001>
module attributes {stable_mosaic.version = 11 : i64} {
  func.func @_estimate_means_kernel(%arg0: i32, %arg1: memref<1x128xi32, #tpu.memory_space<vmem>>, %arg2: memref<128x32xf32, #tpu.memory_space<vmem>>, %arg3: memref<8x32xf32, #tpu.memory_space<vmem>>, %arg4: memref<8x32xf32, #tpu.memory_space<vmem>>, %arg5: memref<8x1xf32, #tpu.memory_space<vmem>>) attributes {dimension_semantics = [#tpu.dimension_semantics<arbitrary>], iteration_bounds = array<i64: 1>, scalar_prefetch = 0 : i64, scratch_operands = 2 : i64, tpu.core_type = #tpu.core_type<tc>, window_params = [{transform_indices = @transform_0, window_bounds = array<i64: 1, 128>}, {transform_indices = @transform_1, window_bounds = array<i64: 128, 32>}, {pipeline_mode = #tpu.pipeline_mode<synchronous>, transform_indices = @transform_2, window_bounds = array<i64: 8, 32>}]} {
    %c0_i32 = arith.constant 0 : i32
    %0 = arith.cmpi eq, %arg0, %c0_i32 : i32
    %1 = arith.extui %0 : i1 to i32
    %c0_i32_0 = arith.constant 0 : i32
    %2 = arith.cmpi ne, %1, %c0_i32_0 : i32
    scf.if %2 {
      %cst_15 = arith.constant 0.000000e+00 : f32
      %22 = vector.broadcast %cst_15 : f32 to vector<8x32xf32>
      %c0_16 = arith.constant 0 : index
      %c0_17 = arith.constant 0 : index
      %23 = vector.load %arg4[%c0_16, %c0_17] : memref<8x32xf32, #tpu.memory_space<vmem>>, vector<8x32xf32>
      tpu.vector_store %arg4[%c0_16, %c0_17], %22 {strides = array<i32>} : memref<8x32xf32, #tpu.memory_space<vmem>>, vector<8x32xf32>,
      %cst_18 = arith.constant 0.000000e+00 : f32
      %24 = vector.broadcast %cst_18 : f32 to vector<8x1xf32>
      %c0_19 = arith.constant 0 : index
      %c0_20 = arith.constant 0 : index
      %25 = vector.load %arg5[%c0_19, %c0_20] : memref<8x1xf32, #tpu.memory_space<vmem>>, vector<8x1xf32>
      tpu.vector_store %arg5[%c0_19, %c0_20], %24 {strides = array<i32>} : memref<8x1xf32, #tpu.memory_space<vmem>>, vector<8x1xf32>,
    } else {
    }
    %c0 = arith.constant 0 : index
    %c0_1 = arith.constant 0 : index
    %3 = vector.load %arg1[%c0, %c0_1] : memref<1x128xi32, #tpu.memory_space<vmem>>, vector<1x128xi32>
    %c0_2 = arith.constant 0 : index
    %c0_3 = arith.constant 0 : index
    %4 = vector.load %arg2[%c0_2, %c0_3] : memref<128x32xf32, #tpu.memory_space<vmem>>, vector<128x32xf32>
    %5 = tpu.iota {dimensions = array<i32: 0>} : vector<8x128xi32>
    %6 = vector.broadcast %3 : vector<1x128xi32> to vector<8x128xi32>
    %7 = arith.cmpi eq, %5, %6 : vector<8x128xi32>
    %8 = arith.extui %7 : vector<8x128xi1> to vector<8x128xi32>
    %9 = arith.sitofp %8 : vector<8x128xi32> to vector<8x128xf32>
    %c0_4 = arith.constant 0 : index
    %c0_5 = arith.constant 0 : index
    %10 = vector.load %arg4[%c0_4, %c0_5] : memref<8x32xf32, #tpu.memory_space<vmem>>, vector<8x32xf32>
    %cst = arith.constant dense<0.000000e+00> : vector<8x32xf32>
    %11 = tpu.matmul %9, %4, %cst {dimension_numbers = #tpu.dot_dimension_numbers<[1], [0], [0], [1], [0, 0, 1, 1], [], []>} : vector<8x128xf32>, vector<128x32xf32>, vector<8x32xf32> -> vector<8x32xf32>
    %12 = arith.addf %10, %11 : vector<8x32xf32>
    %c0_6 = arith.constant 0 : index
    %c0_7 = arith.constant 0 : index
    %13 = vector.load %arg4[%c0_6, %c0_7] : memref<8x32xf32, #tpu.memory_space<vmem>>, vector<8x32xf32>
    tpu.vector_store %arg4[%c0_6, %c0_7], %12 {strides = array<i32>} : memref<8x32xf32, #tpu.memory_space<vmem>>, vector<8x32xf32>,
    %c0_8 = arith.constant 0 : index
    %c0_9 = arith.constant 0 : index
    %14 = vector.load %arg5[%c0_8, %c0_9] : memref<8x1xf32, #tpu.memory_space<vmem>>, vector<8x1xf32>
    %cst_10 = arith.constant dense<0.000000e+00> : vector<8xf32>
    %15 = vector.multi_reduction <add>, %9, %cst_10 [1] : vector<8x128xf32> to vector<8xf32>
    %16 = vector.shape_cast %15 : vector<8xf32> to vector<8x1xf32>
    %17 = arith.addf %14, %16 : vector<8x1xf32>
    %c0_11 = arith.constant 0 : index
    %c0_12 = arith.constant 0 : index
    %18 = vector.load %arg5[%c0_11, %c0_12] : memref<8x1xf32, #tpu.memory_space<vmem>>, vector<8x1xf32>
    tpu.vector_store %arg5[%c0_11, %c0_12], %17 {strides = array<i32>} : memref<8x1xf32, #tpu.memory_space<vmem>>, vector<8x1xf32>,
    %c0_i32_13 = arith.constant 0 : i32
    %19 = arith.cmpi eq, %arg0, %c0_i32_13 : i32
    %20 = arith.extui %19 : i1 to i32
    %c0_i32_14 = arith.constant 0 : i32
    %21 = arith.cmpi ne, %20, %c0_i32_14 : i32
    scf.if %21 {
      %c0_15 = arith.constant 0 : index
      %c0_16 = arith.constant 0 : index
      %22 = vector.load %arg4[%c0_15, %c0_16] : memref<8x32xf32, #tpu.memory_space<vmem>>, vector<8x32xf32>
      %c0_17 = arith.constant 0 : index
      %c0_18 = arith.constant 0 : index
      %23 = vector.load %arg5[%c0_17, %c0_18] : memref<8x1xf32, #tpu.memory_space<vmem>>, vector<8x1xf32>
      %24 = vector.broadcast %23 : vector<8x1xf32> to vector<8x32xf32>
      %25 = arith.divf %22, %24 : vector<8x32xf32>
      %c0_19 = arith.constant 0 : index
      %c0_20 = arith.constant 0 : index
      %26 = vector.load %arg3[%c0_19, %c0_20] : memref<8x32xf32, #tpu.memory_space<vmem>>, vector<8x32xf32>
      tpu.vector_store %arg3[%c0_19, %c0_20], %25 {strides = array<i32>} : memref<8x32xf32, #tpu.memory_space<vmem>>, vector<8x32xf32>,
    } else {
    }
    return
  }
  func.func @transform_0(%arg0: i32) -> (i32, i32) {
    %c0_i32 = arith.constant 0 : i32
    %c0_i32_0 = arith.constant 0 : i32
    return %c0_i32, %arg0 : i32, i32
  }
  func.func @transform_1(%arg0: i32) -> (i32, i32) {
    %c0_i32 = arith.constant 0 : i32
    %c0_i32_0 = arith.constant 0 : i32
    return %arg0, %c0_i32 : i32, i32
  }
  func.func @transform_2(%arg0: i32) -> (i32, i32) {
    %c0_i32 = arith.constant 0 : i32
    %c0_i32_0 = arith.constant 0 : i32
    %c0_i32_1 = arith.constant 0 : i32
    return %c0_i32, %c0_i32_0 : i32, i32
  }
}

</mosaic_0001>

<bundles_post_ra>
// kernel: tpu_custom_call.1
= control target key start
LH: loop header
LB: loop body
LE: loop exit
PB: predicated region body
PF: predicated region fallthrough
CT: control target
= control target key end

     0   :  { %vm18_vm0 = vcmask 7168   ;;  %v37_v0 = vlaneseq  ;;  %vm16_vm1 = vcmask 261120   ;;  %v151_v2 = vmov 0.0   ;;  %s231_s0 = inlined_call_operand.vmem [shape: s32[1,128], index: 0, kind: input, shape index: {}]   ;;  %s232_s1 = inlined_call_operand.vmem [shape: f32[128,32], index: 1, kind: input, shape index: {}]   ;;  %s233_s2 = inlined_call_operand.hbm [shape: f32[8,32], index: 2, kind: output, shape index: {}]  }
   0x1   :  { %v122_v1 = vld [vmem:[%s231_s0] ss:$0 sm:$0xff]  ;;  %19 = vst.msk [vmem:[#allocation3] sm:$0xff] %vm18_vm0, %v151_v2  ;;  %v36_v3 = vld [vmem:[%s232_s1 + $0x78] sm:$0xff]  ;;  %v35_v4 = vld [vmem:[%s232_s1 + $0x70] sm:$0xff] }
   0x2   :  { %v38_v5 = vshrl.u32 %v37_v0, 7  ;;  %17 = vst.msk [vmem:[#allocation2] sm:$0xff] %vm16_vm1, %v151_v2  ;;  %44 = vmatpush.msra.mxu0 %v36_v3  ;;  %v34_v6 = vld [vmem:[%s232_s1 + $0x68] sm:$0xff]  ;;  %v33_v8 = vld [vmem:[%s232_s1 + $0x60] sm:$0xff] }
   0x4   :  { %vm40_vm2 = vcmp.eq.s32.totalorder %v38_v5, %v122_v1  ;;  %45 = vmatpush.msra.mxu0 %v35_v4 }
   0x5   :  { %v115_v7 = vsel %vm40_vm2, 1.0, %v151_v2 }
   0x6   :  { %7 = vsyncpa [#allocation5], 0  ;;  %68 = vadd.xlane.f32.xlu0 %v115_v7  ;;  %46 = vmatpush.msra.mxu0 %v34_v6  ;;  %v32_v9 = vld [vmem:[%s232_s1 + $0x58] sm:$0xff]  ;;  %v31_v10 = vld [vmem:[%s232_s1 + $0x50] sm:$0xff]  ;;  %v152_v21 = vmov 0   ;;  %v153_v22 = vmov 1.0  }
   0x7   :  { %v30_v11 = vld [vmem:[%s232_s1 + $0x48] sm:$0xff]  ;;  %v29_v12 = vld [vmem:[%s232_s1 + $0x40] sm:$0xff]  ;;  %v28_v13 = vld [vmem:[%s232_s1 + $0x38] sm:$0xff]  ;;  %121 = vset.pattern.permute.xlu0 %v152_v21  ;;  %s106_s0 = sshll.u32 %s233_s2, 4  ;;  %s107_s0 = int_to_ptr.hbm [resolvable:$true] %s106_s0 }
   0x8   :  { %47 = vmatpush.msra.mxu0 %v33_v8  ;;  %v27_v14 = vld [vmem:[%s232_s1 + $0x30] sm:$0xff]  ;;  %v26_v15 = vld [vmem:[%s232_s1 + $0x28] sm:$0xff]  ;;  %v25_v16 = vld [vmem:[%s232_s1 + $0x20] sm:$0xff] }
   0x9   :  { %v24_v17 = vld [vmem:[%s232_s1 + $0x18] sm:$0xff]  ;;  %v23_v18 = vld [vmem:[%s232_s1 + $0x10] sm:$0xff]  ;;  %v22_v19 = vld [vmem:[%s232_s1 + $0x8] sm:$0xff] }
   0xa   :  { %48 = vmatpush.msra.mxu0 %v32_v9  ;;  %v21_v20 = vld [vmem:[%s232_s1] sm:$0xff]  ;;  %v67_v23 = vld [vmem:[#allocation3] sm:$0xff]  ;;  %s154_s1 = smov [#allocation4]  }
   0xb   :  { %v43_v27 = vld [vmem:[#allocation2] sm:$0xff]  ;;  %s104_s14 = sshll.u32 %s154_s1, 4  ;;  %s105_s14 = int_to_ptr.vmem [resolvable:$true] %s104_s14 }
   0xc   :  { %49 = vmatpush.msra.mxu0 %v31_v10 }
   0xe   :  { %50 = vmatpush.msra.mxu0 %v30_v11 }
  0x10   :  { %51 = vmatpush.msra.mxu0 %v29_v12 }
  0x12   :  { %52 = vmatpush.msra.mxu0 %v28_v13 }
  0x14   :  { %53 = vmatpush.msra.mxu0 %v27_v14 }
  0x16   :  { %54 = vmatpush.msra.mxu0 %v26_v15 }
  0x18   :  { %55 = vmatpush.msra.mxu0 %v25_v16 }
  0x1a   :  { %56 = vmatpush.msra.mxu0 %v24_v17 }
  0x1c   :  { %57 = vmatpush.msra.mxu0 %v23_v18 }
  0x1e   :  { %58 = vmatpush.msra.mxu0 %v22_v19 }
  0x20   :  { %59 = vmatpush.msra.mxu0 %v21_v20 }
  0x21   :  { %116 = vmatmul.msk.f32.vlgmr.msra.gmra.mxu0 %vm40_vm2, %v153_v22 }
  0x79   :  { %v69_v24 = vpop.xlane.xlu0 %68 }
  0x7a   :  { %v70_v25 = vadd.f32 %v69_v24, %v67_v23 }
  0x7c   :  { %72 = vst.msk [vmem:[#allocation3] sm:$0xff] %vm18_vm0, %v70_v25 }
  0x83   :  { %v77_v26 = vld [vmem:[#allocation3] sm:$0xff] }
  0x84   :  { %80 = vperm.xlu0 %121, %v77_v26  }
  0x9e   :  { %v61_v28 = vpop.f32.mrf.mxu0 }
  0x9f   :  { %v64_v29 = vadd.f32 %v61_v28, %v43_v27 }
  0xa1   :  { %66 = vst.msk [vmem:[#allocation2] sm:$0xff] %vm16_vm1, %v64_v29 }
  0xa8   :  { %v76_v39 = vld [vmem:[#allocation2] sm:$0xff] }
  0xf6   :  { %v81_v30 = vpop.permute.xlu0 %80 }
  0xf7   :  { %123 = vrcp.f32 %v81_v30  ;;  %v94_v34 = vand.u32 2147483648, %v81_v30  ;;  %v92_v36 = vand.u32 2147483647, %v81_v30  ;;  %vm88_vm4 = vweird.f32 %v81_v30 }
  0xf9   :  { %v95_v38 = vor.u32 1.1754944e-38, %v94_v34  ;;  %vm93_vm6 = vcmp.eq.f32.partialorder %v92_v36, 8.507059e+37 }
  0xfd   :  { %v124_v31 = vpop.eup %123 }
  0xfe   :  { %v84_v32 = vmul.f32 %v124_v31, %v81_v30  ;;  %vm89_vm3 = vweird.f32 %v124_v31 }
  0xff   :  { %vm90_vm5 = vmor %vm88_vm4, %vm89_vm3 }
 0x100   :  { %v85_v33 = vsub.f32 1.0, %v84_v32 }
 0x102   :  { %v86_v35 = vmul.f32 %v124_v31, %v85_v33 }
 0x104   :  { %v87_v37 = vadd.f32 %v124_v31, %v86_v35 }
 0x106   :  { %v91_v40 = vsel %vm90_vm5, %v124_v31, %v87_v37 }
 0x107   :  { %v96_v41 = vsel %vm93_vm6, %v95_v38, %v91_v40 }
 0x108   :  { %v97_v42 = vmul.f32 %v96_v41, %v76_v39 }
 0x10a   :  { %98 = vst.msk [vmem:[#allocation4] sm:$0xff] %vm16_vm1, %v97_v42 }
 0x10b   :  { %109 = dma.vmem_to_hbm [thread:$0]  %s105_s14, 128, %s107_s0, [#allocation5]  }
 0x10c   :  { %149 = dma.done.wait [#allocation5], 128  }
 0x10d   :  { %150 = vsyncadd [#allocation5], 4294967168 }
 0x10e   :  { %114 = vsyncpa [#allocation5], 1 }

</bundles_post_ra>
